<compile_context>
chip_gen: v7x
topology: tpu7x:2x2x1
jax: 0.10.0
libtpu: 0.0.40
codegen_flags: <defaults>
</compile_context>

<pallas_src>
import functools

import jax
import jax.numpy as jnp
from jax.experimental import pallas as pl
from jax.experimental.pallas import tpu as pltpu


def _dsnt_kernel(padded, mxu_reduce, *refs):
    # refs (padded):     x, w, g, mask, coord, norm, unnorm
    # refs (not padded): x, w, g,       coord, norm, unnorm
    if padded:
        x_ref, w_ref, g_ref, mask_ref = refs[:4]
        coord_ref, norm_ref, unnorm_ref = refs[4:]
    else:
        x_ref, w_ref, g_ref = refs[:3]
        mask_ref = None
        coord_ref, norm_ref, unnorm_ref = refs[3:]

    x = x_ref[...]                                                   # (R, HWp)
    u = jnp.dot(w_ref[...], x, preferred_element_type=jnp.float32)   # 1x1 conv (block-diag)
    unnorm_ref[...] = u.astype(unnorm_ref.dtype)

    if padded:  # static: additive 0 / -1e30 mask; exp() underflows to exact 0 in padding
        u = u + mask_ref[0:1, :]

    # flat_softmax numerator (numerically stable).
    m = jnp.max(u, axis=-1, keepdims=True)                           # (R, 1)   XLU
    e = jnp.exp(u - m)                                               # (R, HWp) EUP

    if mxu_reduce:
        # Fold [sum e*gx, sum e*gy, sum e] into one matmul on the otherwise-idle MXU.
        red = jnp.dot(e, g_ref[...], preferred_element_type=jnp.float32)   # (R, 128)
        num = red[:, 0:2]                                            # (R, 2)
        s = red[:, 2:3]                                              # (R, 1)
    else:
        gx = g_ref[0:1, :]
        gy = g_ref[1:2, :]
        s = jnp.sum(e, axis=-1, keepdims=True)
        num = jnp.concatenate(
            [jnp.sum(e * gx, axis=-1, keepdims=True),
             jnp.sum(e * gy, axis=-1, keepdims=True)], axis=-1)

    inv = pl.reciprocal(s, approx=False)                # exact: keeps 1e-5 tolerance
    norm_ref[...] = (e * inv).astype(norm_ref.dtype)
    coord_ref[...] = (num * inv).astype(coord_ref.dtype)


def _normalized_linspace(length):
    # dsntnn.normalized_linspace: (2*i - length + 1) / length
    i = jnp.arange(length, dtype=jnp.float32)
    return (2.0 * i - (length - 1.0)) / length


def _vmem_capacity_bytes():
    try:
        info = pltpu.get_tpu_info()
        for attr in ("vmem_capacity_bytes", "vmem_bytes", "vmem_size_bytes"):
            v = getattr(info, attr, None)
            if v:
                return int(v)
    except Exception:
        pass
    try:
        if "v7" in jax.devices()[0].device_kind.lower():
            return 64 << 20
    except Exception:
        pass
    return 128 << 20


def _pick_bt(B, C, hwp, slab_budget, row_cap=256):
    """Batches per block.

    rows = Bt*C must be a multiple of 8 (or cover the whole array) for (8,128) tiling;
    rows*HWp*4 should fit the per-slab budget; rows stays <= row_cap so kron zero-block
    waste never matters; and n_blocks >= 2 is preferred so the "parallel" axis can shard
    across v7x's two TensorCores.
    """
    cands = [d for d in range(1, B + 1) if B % d == 0 and ((d * C) % 8 == 0 or d == B)]
    fit = [d for d in cands if d * C * hwp * 4 <= slab_budget]
    if not fit:
        # TODO(synk): add an HWp-tiled online-softmax fallback (second "arbitrary" grid
        # axis with m/l/coord scratch) for very large H*W that cannot fit a single slab.
        fit = [min(cands, key=lambda d: d * C)]
    capped = [d for d in fit if d * C <= row_cap] or fit
    multi = [d for d in capped if B // d >= 2]
    return max(multi or capped)


@jax.jit
def dsnt_regressor_forward(x, weight):
    """x: (B, C, H, W) float32; weight: (C, C) float32 (1x1 conv weight, bias-free)."""
    B, C, H, W = x.shape
    HW = H * W
    HWp = ((HW + 127) // 128) * 128          # lane-dense flattened spatial axis
    padded = HWp != HW
    BC = B * C

    xf = x.reshape(BC, HW)
    if padded:
        xf = jnp.pad(xf, ((0, 0), (0, HWp - HW)))

    # dsnt coordinate grid (x varies fastest along flattened index h*W + w).
    xs = _normalized_linspace(W)             # (W,)
    ys = _normalized_linspace(H)             # (H,)
    gx = jnp.tile(xs, (H,))                  # (HW,)
    gy = jnp.repeat(ys, W)                   # (HW,)

    # ---- per-generation VMEM sizing -------------------------------------------------
    vmem_cap = _vmem_capacity_bytes()
    vmem_budget = max(min(vmem_cap * 3 // 4, 100 << 20), 16 << 20)   # ~96 MiB v5e/v6e, ~48 MiB v7x

    # MXU-reduction matrix only when its resident (HWp, 128) tile is cheap to hold.
    gred_bytes = HWp * 128 * 4
    mxu_reduce = 2 * gred_bytes <= min(vmem_budget // 8, 8 << 20)

    if mxu_reduce:
        g = jnp.zeros((HWp, 128), jnp.float32)
        g = g.at[:HW, 0].set(gx).at[:HW, 1].set(gy).at[:HW, 2].set(1.0)
        g_bytes = gred_bytes
        g_spec = pl.BlockSpec((HWp, 128), lambda i: (0, 0))
    else:
        g = jnp.zeros((8, HWp), jnp.float32)
        g = g.at[0, :HW].set(gx).at[1, :HW].set(gy)
        g_bytes = 8 * HWp * 4
        g_spec = pl.BlockSpec((8, HWp), lambda i: (0, 0))

    mask_bytes = 8 * HWp * 4 if padded else 0
    resident_est = 2 * (g_bytes + mask_bytes + (min(256, BC) ** 2) * 4)
    # ~10 live full-size (R, HWp) f32 slabs: x (x2 buffers), norm (x2), unnorm (x2),
    # plus u / e / fused temporaries.
    slab_budget = max((vmem_budget - resident_est - (6 << 20)) // 10, 256 << 10)

    Bt = _pick_bt(B, C, HWp, slab_budget)
    R = Bt * C
    n_blocks = B // Bt
    slab = R * HWp * 4
    resident = 2 * (g_bytes + mask_bytes + R * R * 4)
    needed = 10 * slab + resident + (6 << 20)
    vmem_limit = int(min(max(needed, 32 << 20), vmem_cap - (8 << 20)))

    w_big = jnp.kron(jnp.eye(Bt, dtype=weight.dtype), weight)        # (R, R) block-diagonal

    inputs = [xf, w_big, g]
    in_specs = [
        pl.BlockSpec((R, HWp), lambda i: (i, 0)),    # streaming input rows
        pl.BlockSpec((R, R), lambda i: (0, 0)),      # resident block-diag conv weight
        g_spec,                                      # resident reduction grid
    ]
    if padded:
        mask = jnp.zeros((8, HWp), jnp.float32).at[0, HW:].set(-1e30)
        inputs.append(mask)
        in_specs.append(pl.BlockSpec((8, HWp), lambda i: (0, 0)))    # resident additive mask

    out_shapes = (
        jax.ShapeDtypeStruct((BC, 2), jnp.float32),      # coords (x, y) per row
        jax.ShapeDtypeStruct((BC, HWp), jnp.float32),    # normalized heatmaps (flat)
        jax.ShapeDtypeStruct((BC, HWp), jnp.float32),    # unnormalized heatmaps (flat)
    )
    out_specs = [
        pl.BlockSpec((R, 2), lambda i: (i, 0)),
        pl.BlockSpec((R, HWp), lambda i: (i, 0)),
        pl.BlockSpec((R, HWp), lambda i: (i, 0)),
    ]

    coords_flat, norm_flat, unnorm_flat = pl.pallas_call(
        functools.partial(_dsnt_kernel, padded, mxu_reduce),
        out_shape=out_shapes,
        grid_spec=pltpu.PrefetchScalarGridSpec(
            num_scalar_prefetch=0,
            grid=(n_blocks,),
            in_specs=in_specs,
            out_specs=out_specs,
        ),
        compiler_params=pltpu.CompilerParams(
            dimension_semantics=("parallel",),
            vmem_limit_bytes=vmem_limit,
        ),
    )(*inputs)

    coords = coords_flat.reshape(B, C, 2)
    normalized_heatmaps = norm_flat[:, :HW].reshape(B, C, H, W)
    unnormalized_heatmaps = unnorm_flat[:, :HW].reshape(B, C, H, W)
    return coords, normalized_heatmaps, unnormalized_heatmaps


def _reference_forward(x, weight):
    """Pure-JAX reference mirroring the PyTorch module."""
    B, C, H, W = x.shape
    u = jnp.einsum("oc,bchw->bohw", weight, x)
    flat = u.reshape(B, C, H * W)
    p = jax.nn.softmax(flat, axis=-1).reshape(B, C, H, W)
    xs = _normalized_linspace(W)
    ys = _normalized_linspace(H)
    x_coord = jnp.sum(p * xs[None, None, None, :], axis=(2, 3))
    y_coord = jnp.sum(p * ys[None, None, :, None], axis=(2, 3))
    coords = jnp.stack([x_coord, y_coord], axis=-1)
    return coords, p, u


if __name__ == "__main__":
    key = jax.random.PRNGKey(0)
    k_x, k_w = jax.random.split(key)

    B, C, H, W = 2, 4, 16, 16   # batch=2, n_coords=4, spatial 16x16
    x = jax.random.normal(k_x, (B, C, H, W), dtype=jnp.float32)

    # nn.Conv2d default init: U(-1/sqrt(fan_in), 1/sqrt(fan_in)), fan_in = n_coords.
    bound = 1.0 / jnp.sqrt(jnp.float32(C))
    weight = jax.random.uniform(k_w, (C, C), dtype=jnp.float32,
                                minval=-bound, maxval=bound)

    coords, norm_hm, unnorm_hm = dsnt_regressor_forward(x, weight)
    jax.block_until_ready((coords, norm_hm, unnorm_hm))

    # Sanity check vs pure-JAX reference.
    ref_coords, ref_norm, ref_unnorm = _reference_forward(x, weight)
    assert coords.shape == (B, C, 2)
    assert norm_hm.shape == (B, C, H, W)
    assert unnorm_hm.shape == (B, C, H, W)
    assert jnp.allclose(coords, ref_coords, atol=1e-5)
    assert jnp.allclose(norm_hm, ref_norm, atol=1e-5)
    assert jnp.allclose(unnorm_hm, ref_unnorm, atol=1e-5)

    print("KERNEL_OK")
</pallas_src>

<mosaic_0001>
module attributes {stable_mosaic.version = 11 : i64} {
  func.func @_dsnt_kernel(%arg0: i32, %arg1: memref<8x256xf32, #tpu.memory_space<vmem>>, %arg2: memref<8x8xf32, #tpu.memory_space<vmem>>, %arg3: memref<256x128xf32, #tpu.memory_space<vmem>>, %arg4: memref<8x2xf32, #tpu.memory_space<vmem>>, %arg5: memref<8x256xf32, #tpu.memory_space<vmem>>, %arg6: memref<8x256xf32, #tpu.memory_space<vmem>>) attributes {dimension_semantics = [#tpu.dimension_semantics<parallel>], iteration_bounds = array<i64: 1>, scalar_prefetch = 0 : i64, scratch_operands = 0 : i64, tpu.core_type = #tpu.core_type<tc>, window_params = [{transform_indices = @transform_0, window_bounds = array<i64: 8, 256>}, {pipeline_mode = #tpu.pipeline_mode<synchronous>, transform_indices = @transform_1, window_bounds = array<i64: 8, 8>}, {pipeline_mode = #tpu.pipeline_mode<synchronous>, transform_indices = @transform_2, window_bounds = array<i64: 256, 128>}, {transform_indices = @transform_3, window_bounds = array<i64: 8, 2>}, {transform_indices = @transform_4, window_bounds = array<i64: 8, 256>}, {transform_indices = @transform_5, window_bounds = array<i64: 8, 256>}]} {
    %c0 = arith.constant 0 : index
    %c0_0 = arith.constant 0 : index
    %0 = vector.load %arg1[%c0, %c0_0] : memref<8x256xf32, #tpu.memory_space<vmem>>, vector<8x256xf32>
    %c0_1 = arith.constant 0 : index
    %c0_2 = arith.constant 0 : index
    %1 = vector.load %arg2[%c0_1, %c0_2] : memref<8x8xf32, #tpu.memory_space<vmem>>, vector<8x8xf32>
    %cst = arith.constant dense<0.000000e+00> : vector<8x256xf32>
    %2 = tpu.matmul %1, %0, %cst {dimension_numbers = #tpu.dot_dimension_numbers<[1], [0], [0], [1], [0, 0, 1, 1], [], []>} : vector<8x8xf32>, vector<8x256xf32>, vector<8x256xf32> -> vector<8x256xf32>
    %c0_3 = arith.constant 0 : index
    %c0_4 = arith.constant 0 : index
    %3 = vector.load %arg6[%c0_3, %c0_4] : memref<8x256xf32, #tpu.memory_space<vmem>>, vector<8x256xf32>
    tpu.vector_store %arg6[%c0_3, %c0_4], %2 {strides = array<i32>} : memref<8x256xf32, #tpu.memory_space<vmem>>, vector<8x256xf32>,
    %cst_5 = arith.constant dense<0xFF800000> : vector<8xf32>
    %4 = vector.multi_reduction <maximumf>, %2, %cst_5 [1] : vector<8x256xf32> to vector<8xf32>
    %5 = vector.shape_cast %4 : vector<8xf32> to vector<8x1xf32>
    %6 = vector.broadcast %5 : vector<8x1xf32> to vector<8x256xf32>
    %7 = arith.subf %2, %6 : vector<8x256xf32>
    %8 = math.exp %7 : vector<8x256xf32>
    %c0_6 = arith.constant 0 : index
    %c0_7 = arith.constant 0 : index
    %9 = vector.load %arg3[%c0_6, %c0_7] : memref<256x128xf32, #tpu.memory_space<vmem>>, vector<256x128xf32>
    %cst_8 = arith.constant dense<0.000000e+00> : vector<8x128xf32>
    %10 = tpu.matmul %8, %9, %cst_8 {dimension_numbers = #tpu.dot_dimension_numbers<[1], [0], [0], [1], [0, 0, 1, 1], [], []>} : vector<8x256xf32>, vector<256x128xf32>, vector<8x128xf32> -> vector<8x128xf32>
    %11 = vector.extract_strided_slice %10 {offsets = [0, 0], sizes = [8, 2], strides = [1, 1]} : vector<8x128xf32> to vector<8x2xf32>
    %12 = vector.extract_strided_slice %10 {offsets = [0, 2], sizes = [8, 1], strides = [1, 1]} : vector<8x128xf32> to vector<8x1xf32>
    %13 = tpu.reciprocal %12 : vector<8x1xf32> -> vector<8x1xf32>
    %14 = vector.broadcast %13 : vector<8x1xf32> to vector<8x256xf32>
    %15 = arith.mulf %8, %14 : vector<8x256xf32>
    %c0_9 = arith.constant 0 : index
    %c0_10 = arith.constant 0 : index
    %16 = vector.load %arg5[%c0_9, %c0_10] : memref<8x256xf32, #tpu.memory_space<vmem>>, vector<8x256xf32>
    tpu.vector_store %arg5[%c0_9, %c0_10], %15 {strides = array<i32>} : memref<8x256xf32, #tpu.memory_space<vmem>>, vector<8x256xf32>,
    %17 = vector.broadcast %13 : vector<8x1xf32> to vector<8x2xf32>
    %18 = arith.mulf %11, %17 : vector<8x2xf32>
    %c0_11 = arith.constant 0 : index
    %c0_12 = arith.constant 0 : index
    %19 = vector.load %arg4[%c0_11, %c0_12] : memref<8x2xf32, #tpu.memory_space<vmem>>, vector<8x2xf32>
    tpu.vector_store %arg4[%c0_11, %c0_12], %18 {strides = array<i32>} : memref<8x2xf32, #tpu.memory_space<vmem>>, vector<8x2xf32>,
    return
  }
  func.func @transform_0(%arg0: i32) -> (i32, i32) {
    %c0_i32 = arith.constant 0 : i32
    %c0_i32_0 = arith.constant 0 : i32
    return %arg0, %c0_i32 : i32, i32
  }
  func.func @transform_1(%arg0: i32) -> (i32, i32) {
    %c0_i32 = arith.constant 0 : i32
    %c0_i32_0 = arith.constant 0 : i32
    %c0_i32_1 = arith.constant 0 : i32
    return %c0_i32, %c0_i32_0 : i32, i32
  }
  func.func @transform_2(%arg0: i32) -> (i32, i32) {
    %c0_i32 = arith.constant 0 : i32
    %c0_i32_0 = arith.constant 0 : i32
    %c0_i32_1 = arith.constant 0 : i32
    return %c0_i32, %c0_i32_0 : i32, i32
  }
  func.func @transform_3(%arg0: i32) -> (i32, i32) {
    %c0_i32 = arith.constant 0 : i32
    %c0_i32_0 = arith.constant 0 : i32
    return %arg0, %c0_i32 : i32, i32
  }
  func.func @transform_4(%arg0: i32) -> (i32, i32) {
    %c0_i32 = arith.constant 0 : i32
    %c0_i32_0 = arith.constant 0 : i32
    return %arg0, %c0_i32 : i32, i32
  }
  func.func @transform_5(%arg0: i32) -> (i32, i32) {
    %c0_i32 = arith.constant 0 : i32
    %c0_i32_0 = arith.constant 0 : i32
    return %arg0, %c0_i32 : i32, i32
  }
}

</mosaic_0001>

<bundles_post_ra>
// kernel: dsnt_regressor_forward.1
= control target key start
LH: loop header
LB: loop body
LE: loop exit
PB: predicated region body
PF: predicated region fallthrough
CT: control target
= control target key end

     0   :  { %v310_v2 = vmov 0.0   ;;  %vm20_vm0 = vcmask 64512   ;;  %v311_v62 = vmov 2   ;;  %vm219_vm1 = vcmask 15360   ;;  %s462_s0 = inlined_call_operand.vmem [shape: f32[8,256], index: 0, kind: input, shape index: {}]   ;;  %s463_s1 = inlined_call_operand.vmem [shape: f32[8,8], index: 1, kind: input, shape index: {}]   ;;  %s464_s2 = inlined_call_operand.vmem [shape: f32[256,128], index: 2, kind: input, shape index: {}]   ;;  %s465_s5 = inlined_call_operand.vmem [shape: f32[8,256], index: 5, kind: output, shape index: {2}]   ;;  %s466_s3 = inlined_call_operand.vmem [shape: f32[8,2], index: 3, kind: output, shape index: {0}]   ;;  %s467_s4 = inlined_call_operand.vmem [shape: f32[8,256], index: 4, kind: output, shape index: {1}]  }
   0x1   :  { %v18_v0 = vld [vmem:[%s462_s0 + $0x8] sm:$0xff]  ;;  %v17_v1 = vld [vmem:[%s462_s0] sm:$0xff]  ;;  %88 = vmatprep.mubr.f32.mxu0 %v310_v2  ;;  %v124_v9 = vld [vmem:[%s464_s2 + $0x90] sm:$0xff]  ;;  %303 = vset.pattern.permute.xlu0 %v311_v62 }
   0x2   :  { %v19_v3 = vld [vmem:[%s463_s1] sm:$0xff]  ;;  %24 = vmatprep.subr.mxu0 %v18_v0  ;;  %v123_v5 = vld [vmem:[%s464_s2 + $0x88] sm:$0xff]  ;;  %v125_v10 = vld [vmem:[%s464_s2 + $0x98] sm:$0xff] }
   0x3   :  { %25 = vmatpush1.msra.mxu0 %v17_v1  ;;  %v122_v4 = vld [vmem:[%s464_s2 + $0x80] sm:$0xff]  ;;  %v107_v8 = vld [vmem:[%s464_s2 + $0x8] sm:$0xff]  ;;  %v273_v12 = vpack.c.bf16 %v125_v10, %v124_v9  ;;  %v108_v13 = vld [vmem:[%s464_s2 + $0x10] sm:$0xff] }
   0x4   :  { %233 = vmatmul.mubr.msk.f32.vlgmr.msra.gmra.mrb[0].mxu0 %vm20_vm0, %v19_v3  ;;  %v106_v6 = vld [vmem:[%s464_s2] sm:$0xff]  ;;  %v269_v7 = vpack.c.bf16 %v123_v5, %v122_v4  ;;  %v109_v14 = vld [vmem:[%s464_s2 + $0x18] sm:$0xff]  ;;  %v127_v16 = vld [vmem:[%s464_s2 + $0xa8] sm:$0xff] }
   0x5   :  { %v271_v11 = vpack.c.bf16 %v107_v8, %v106_v6  ;;  %v126_v15 = vld [vmem:[%s464_s2 + $0xa0] sm:$0xff]  ;;  %v275_v17 = vpack.c.bf16 %v109_v14, %v108_v13  ;;  %v111_v20 = vld [vmem:[%s464_s2 + $0x28] sm:$0xff]  ;;  %v128_v21 = vld [vmem:[%s464_s2 + $0xb0] sm:$0xff] }
   0x6   :  { %270 = vmatprep.subr.bf16.mxu1 %v269_v7  ;;  %v277_v18 = vpack.c.bf16 %v127_v16, %v126_v15  ;;  %v110_v19 = vld [vmem:[%s464_s2 + $0x20] sm:$0xff]  ;;  %v129_v22 = vld [vmem:[%s464_s2 + $0xb8] sm:$0xff]  ;;  %v112_v25 = vld [vmem:[%s464_s2 + $0x30] sm:$0xff] }
   0x7   :  { %272 = vmatpush3.bf16.msra.mxu1 %v271_v11  ;;  %v279_v23 = vpack.c.bf16 %v111_v20, %v110_v19  ;;  %v281_v24 = vpack.c.bf16 %v129_v22, %v128_v21  ;;  %v113_v26 = vld [vmem:[%s464_s2 + $0x38] sm:$0xff]  ;;  %v130_v31 = vld [vmem:[%s464_s2 + $0xc0] sm:$0xff]  ;;  %v131_v32 = vld [vmem:[%s464_s2 + $0xc8] sm:$0xff] }
   0x8   :  { %274 = vmatprep.subr.bf16.mxu1 %v273_v12  ;;  %v283_v27 = vpack.c.bf16 %v113_v26, %v112_v25  ;;  %v285_v33 = vpack.c.bf16 %v131_v32, %v130_v31  ;;  %v114_v34 = vld [vmem:[%s464_s2 + $0x40] sm:$0xff]  ;;  %v115_v35 = vld [vmem:[%s464_s2 + $0x48] sm:$0xff]  ;;  %v132_v37 = vld [vmem:[%s464_s2 + $0xd0] sm:$0xff] }
   0x9   :  { %v287_v36 = vpack.c.bf16 %v115_v35, %v114_v34  ;;  %v133_v38 = vld [vmem:[%s464_s2 + $0xd8] sm:$0xff]  ;;  %v116_v40 = vld [vmem:[%s464_s2 + $0x50] sm:$0xff]  ;;  %v134_v43 = vld [vmem:[%s464_s2 + $0xe0] sm:$0xff] }
   0xa   :  { %v289_v39 = vpack.c.bf16 %v133_v38, %v132_v37  ;;  %v117_v41 = vld [vmem:[%s464_s2 + $0x58] sm:$0xff]  ;;  %v135_v44 = vld [vmem:[%s464_s2 + $0xe8] sm:$0xff]  ;;  %v118_v45 = vld [vmem:[%s464_s2 + $0x60] sm:$0xff] }
   0xb   :  { %276 = vmatpush3.bf16.msra.mxu1 %v275_v17  ;;  %v291_v42 = vpack.c.bf16 %v117_v41, %v116_v40  ;;  %v293_v46 = vpack.c.bf16 %v135_v44, %v134_v43  ;;  %v119_v47 = vld [vmem:[%s464_s2 + $0x68] sm:$0xff]  ;;  %v136_v48 = vld [vmem:[%s464_s2 + $0xf0] sm:$0xff]  ;;  %v137_v49 = vld [vmem:[%s464_s2 + $0xf8] sm:$0xff] }
   0xc   :  { %278 = vmatprep.subr.bf16.mxu1 %v277_v18  ;;  %v295_v50 = vpack.c.bf16 %v119_v47, %v118_v45  ;;  %v297_v51 = vpack.c.bf16 %v137_v49, %v136_v48  ;;  %v120_v52 = vld [vmem:[%s464_s2 + $0x70] sm:$0xff]  ;;  %v121_v53 = vld [vmem:[%s464_s2 + $0x78] sm:$0xff] }
   0xd   :  { %v299_v54 = vpack.c.bf16 %v121_v53, %v120_v52 }
   0xf   :  { %280 = vmatpush3.bf16.msra.mxu1 %v279_v23 }
  0x10   :  { %282 = vmatprep.subr.bf16.mxu1 %v281_v24 }
  0x13   :  { %284 = vmatpush3.bf16.msra.mxu1 %v283_v27 }
  0x14   :  { %286 = vmatprep.subr.bf16.mxu1 %v285_v33 }
  0x17   :  { %288 = vmatpush3.bf16.msra.mxu1 %v287_v36 }
  0x18   :  { %290 = vmatprep.subr.bf16.mxu1 %v289_v39 }
  0x1b   :  { %292 = vmatpush3.bf16.msra.mxu1 %v291_v42 }
  0x1c   :  { %294 = vmatprep.subr.bf16.mxu1 %v293_v46 }
  0x1f   :  { %296 = vmatpush3.bf16.msra.mxu1 %v295_v50 }
  0x20   :  { %298 = vmatprep.subr.bf16.mxu1 %v297_v51 }
  0x23   :  { %300 = vmatpush3.bf16.msra.mxu1 %v299_v54 }
  0xd7   :  { %v90_v28 = vpop.f32.mrb[0].mxu0 }
  0xd8   :  { %v92_v29 = vpop.f32.mrb[1].mxu0  ;;  %95 = vst [vmem:[%s465_s5] sm:$0xff] %v90_v28 }
  0xd9   :  { %96 = vst [vmem:[%s465_s5 + $0x8] sm:$0xff] %v92_v29  ;;  %v97_v30 = vmax.f32 %v90_v28, %v92_v29 }
  0xdb   :  { %98 = vmax.xlane.f32.xlu0 %v97_v30 }
 0x168   :  { %v99_v55 = vpop.xlane.xlu0 %98 }
 0x169   :  { %v100_v56 = vsub.f32 %v90_v28, %v99_v55  ;;  %v101_v57 = vsub.f32 %v92_v29, %v99_v55 }
 0x16b   :  { %v102_v58 = vmul.f32 1.442695, %v100_v56  ;;  %v104_v59 = vmul.f32 1.442695, %v101_v57 }
 0x16d   :  { %304 = vpow2.f32 %v102_v58 }
 0x16e   :  { %306 = vpow2.f32 %v104_v59 }
 0x177   :  { %v305_v60 = vpop.eup %304 }
 0x178   :  { %v307_v61 = vpop.eup %306 }
 0x179   :  { %202 = vmatprep.mubr.f32.mxu1 %v307_v61 }
 0x17a   :  { %203 = vmatmul.mubr.f32.vlgmr.msra.gmra.mrb[0].mxu1 %v305_v60 }
 0x24d   :  { %v266_v63 = vpop.f32.mrb[0].mxu1 }
 0x24e   :  { %v267_v0 = vpop.f32.mrb[1].mxu1 }
 0x24f   :  { %v268_v1 = vadd.f32 %v267_v0, %v266_v63 }
 0x251   :  { %308 = vrcp.f32 %v268_v1 }
 0x25b   :  { %v309_v2 = vpop.eup %308 }
 0x25c   :  { %211 = vperm.xlu0 %303, %v309_v2  }
 0x2db   :  { %v212_v3 = vpop.permute.xlu0 %211 }
 0x2dc   :  { %v214_v4 = vmul.f32 %v305_v60, %v212_v3  ;;  %v215_v5 = vmul.f32 %v307_v61, %v212_v3  ;;  %v218_v6 = vmul.f32 %v268_v1, %v212_v3 }
 0x2de   :  { %216 = vst [vmem:[%s467_s4] sm:$0xff] %v214_v4  ;;  %217 = vst [vmem:[%s467_s4 + $0x8] sm:$0xff] %v215_v5 }
 0x2df   :  { %220 = vst.msk [vmem:[%s466_s3] sm:$0xff] %vm219_vm1, %v218_v6 }

</bundles_post_ra>
